<compile_context>
chip_gen: v5e
topology: v5e:2x2
jax: 0.10.0
libtpu: 0.0.40
codegen_flags: <defaults>
</compile_context>

<pallas_src>
import functools

import numpy as np

import jax
import jax.numpy as jnp
from jax.experimental import pallas as pl
from jax.experimental.pallas import tpu as pltpu

LANE = 128


def _rup(n, m):
    return ((n + m - 1) // m) * m


def _pad2(a, rows, cols):
    return jnp.pad(a, ((0, rows - a.shape[0]), (0, cols - a.shape[1])))


def _pick_tile_b(batch):
    """Batch tile: >=2 grid steps when possible (v7x dual-TC), 16-sublane
    rounding for bf16 activations, 256/512-row tiles for large batches."""
    half = -(-batch // 2)
    if half >= 512:
        return 512
    if half >= 256:
        return 256
    return _rup(max(half, 8), 16)


# ----------------------------- kernel ---------------------------------------


def _vae_kernel(n_enc_hidden, n_dec_hidden, zp, *refs):
    """One batch tile of the full VAE forward; weights resident in VMEM."""
    idx = 0

    def nxt():
        nonlocal idx
        r = refs[idx]
        idx += 1
        return r

    x_ref = nxt()      # (TILE_B, Xp)  bf16
    eps_ref = nxt()    # (TILE_B, Zp)  bf16

    enc_layers = [(nxt(), nxt()) for _ in range(n_enc_hidden)]
    head_w_ref, head_b_ref = nxt(), nxt()            # fused mu | log_var head
    dec_layers = [(nxt(), nxt()) for _ in range(n_dec_hidden)]
    rec_w_ref, rec_b_ref = nxt(), nxt()
    pack_ref = nxt()   # (2*Zp, Zp) f32 0/1 selection matrix (latent packing)

    xhat_ref = nxt()   # (TILE_B, Xp)  bf16
    latent_ref = nxt()  # (TILE_B, Zp) f32 packed [z | mu | log_var | 0...]

    # ---- Encoder: Linear (+ReLU except on the last hidden layer) ----
    h = x_ref[...]                                    # bf16
    for i, (w_ref, b_ref) in enumerate(enc_layers):
        a = jnp.dot(h, w_ref[...], preferred_element_type=jnp.float32)
        a = a + b_ref[...]
        if i < n_enc_hidden - 1:
            a = jnp.maximum(a, 0.0)
        h = a.astype(jnp.bfloat16)

    # ---- StochasticGaussian: fused mu/log_var head + reparameterization ----
    head = jnp.dot(h, head_w_ref[...], preferred_element_type=jnp.float32)
    head = head + head_b_ref[...]                     # (TILE_B, 2*Zp) f32
    mu = head[:, :zp]
    log_var = head[:, zp:]
    std = jnp.exp(0.5 * log_var)
    z = mu + std * eps_ref[...].astype(jnp.float32)   # f32 reparam

    # ---- Decoder: ReLU(Linear)... then Sigmoid(Linear) ----
    d = z.astype(jnp.bfloat16)
    for (w_ref, b_ref) in dec_layers:
        a = jnp.dot(d, w_ref[...], preferred_element_type=jnp.float32)
        d = jnp.maximum(a + b_ref[...], 0.0).astype(jnp.bfloat16)
    logits = jnp.dot(d, rec_w_ref[...], preferred_element_type=jnp.float32)
    logits = logits + rec_b_ref[...]

    # Numerically-stable sigmoid: EUP exp + approx reciprocal (EUP slot).
    e = jnp.exp(-jnp.abs(logits))
    x_hat = jnp.where(logits >= 0.0, 1.0, e) * pl.reciprocal(1.0 + e, approx=True)
    xhat_ref[...] = x_hat.astype(xhat_ref.dtype)

    # Packed latent, single wide store. Padded lanes of z are exactly zero and
    # the 0/1 selection matmul is exact in f32, so this is [z | mu | log_var].
    latent_ref[...] = z + jnp.dot(head, pack_ref[...],
                                  preferred_element_type=jnp.float32)


# ----------------------------- packing (one-time) ----------------------------


def pack_params(flat_params, x_dim, z_dim, h_dim):
    """Pad to lane width, cast weights to bf16, fuse mu/log_var heads and build
    the latent-packing selection matrix. Call ONCE and reuse."""
    assert 3 * z_dim <= LANE, "packed latent layout requires 3*z_dim <= 128"
    # TODO(synk): fall back to a wider latent block if 3*z_dim ever exceeds 128.

    xp = _rup(x_dim, LANE)
    zp = _rup(z_dim, LANE)
    hps = [_rup(h, LANE) for h in h_dim]

    it = iter(flat_params)
    packed = []

    # Encoder hidden: x_dim -> h_dim[0] -> ... -> h_dim[-1]
    in_p = [xp, *hps[:-1]]
    for i in range(len(h_dim)):
        w, b = next(it), next(it)
        packed.append(_pad2(w, in_p[i], hps[i]).astype(jnp.bfloat16))
        packed.append(_pad2(b, 1, hps[i]))

    # Fused Gaussian heads: (h_last, 2*Zp)
    mu_w, mu_b = next(it), next(it)
    lv_w, lv_b = next(it), next(it)
    head_w = jnp.concatenate(
        [_pad2(mu_w, hps[-1], zp), _pad2(lv_w, hps[-1], zp)], axis=1
    ).astype(jnp.bfloat16)
    head_b = jnp.concatenate([_pad2(mu_b, 1, zp), _pad2(lv_b, 1, zp)], axis=1)
    packed += [head_w, head_b]

    # Decoder hidden: z_dim -> reversed(h_dim)
    dec_h = list(reversed(h_dim))
    dec_hp = list(reversed(hps))
    din_p = [zp, *dec_hp[:-1]]
    for i in range(len(dec_h)):
        w, b = next(it), next(it)
        packed.append(_pad2(w, din_p[i], dec_hp[i]).astype(jnp.bfloat16))
        packed.append(_pad2(b, 1, dec_hp[i]))

    # Reconstruction: dec_h[-1] -> x_dim
    rw, rb = next(it), next(it)
    packed.append(_pad2(rw, dec_hp[-1], xp).astype(jnp.bfloat16))
    packed.append(_pad2(rb, 1, xp))

    # Selection matrix: maps head=[mu | log_var] lanes onto the packed latent
    # lanes [z_dim:2*z_dim] and [2*z_dim:3*z_dim] (exact 0/1 f32 matmul).
    sel = np.zeros((2 * zp, zp), np.float32)
    sel[np.arange(z_dim), z_dim + np.arange(z_dim)] = 1.0
    sel[zp + np.arange(z_dim), 2 * z_dim + np.arange(z_dim)] = 1.0
    packed.append(jnp.asarray(sel))

    return packed, xp, zp


# ----------------------------- forward (hot path) ----------------------------


def _vae_forward_packed(x, eps, packed, x_dim, z_dim, h_dim, xp, zp):
    B = x.shape[0]
    n_enc = n_dec = len(h_dim)

    tile_b = _pick_tile_b(B)
    b_pad = _rup(B, tile_b)
    grid = (b_pad // tile_b,)

    x_p = _pad2(x, b_pad, xp).astype(jnp.bfloat16)
    eps_p = _pad2(eps, b_pad, zp).astype(jnp.bfloat16)

    in_specs = [
        pl.BlockSpec((tile_b, xp), lambda i: (i, 0)),    # x tile streams
        pl.BlockSpec((tile_b, zp), lambda i: (i, 0)),    # eps tile streams
    ] + [
        # Constant block index -> DMA'd once, resident across all batch tiles.
        pl.BlockSpec(p.shape, lambda i: (0, 0)) for p in packed
    ]
    out_specs = (
        pl.BlockSpec((tile_b, xp), lambda i: (i, 0)),
        pl.BlockSpec((tile_b, zp), lambda i: (i, 0)),
    )
    out_shape = (
        jax.ShapeDtypeStruct((b_pad, xp), jnp.bfloat16),   # x_hat (bf16 writeback)
        jax.ShapeDtypeStruct((b_pad, zp), jnp.float32),    # packed [z|mu|log_var]
    )

    weights = [p for p in packed if p.ndim == 2 and p.shape[0] > 1]
    flops = 2 * b_pad * sum(int(w.shape[0]) * int(w.shape[1]) for w in weights)
    transcendentals = b_pad * (zp + 2 * xp)
    weight_bytes = sum(int(p.size) * p.dtype.itemsize for p in packed)
    bytes_accessed = (
        int(x_p.size) * 2 + int(eps_p.size) * 2 + weight_bytes
        + b_pad * xp * 2 + b_pad * zp * 4
    )

    # VMEM budget from the actual footprint (double-buffered tiles + resident
    # weights) with generous margin; stays far below v7x's 64 MiB.
    tile_bytes = tile_b * (xp * 2 + zp * 2 + xp * 2 + zp * 4)
    vmem_limit = int(min(48 * 2**20,
                         max(16 * 2**20, 4 * (2 * tile_bytes + 2 * weight_bytes))))

    xhat_p, latent_p = pl.pallas_call(
        functools.partial(_vae_kernel, n_enc, n_dec, zp),
        out_shape=out_shape,
        grid=grid,
        in_specs=in_specs,
        out_specs=out_specs,
        compiler_params=pltpu.CompilerParams(
            dimension_semantics=("parallel",),
            vmem_limit_bytes=vmem_limit,
        ),
        cost_estimate=pl.CostEstimate(
            flops=int(flops),
            transcendentals=int(transcendentals),
            bytes_accessed=int(bytes_accessed),
        ),
    )(x_p, eps_p, *packed)

    x_hat = xhat_p[:B, :x_dim].astype(jnp.float32)
    z = latent_p[:B, 0:z_dim]
    mu = latent_p[:B, z_dim:2 * z_dim]
    log_var = latent_p[:B, 2 * z_dim:3 * z_dim]
    return x_hat, z, mu, log_var


def make_vae_forward(flat_params, x_dim, z_dim, h_dim):
    """Pack parameters once; return a jitted forward(x, eps) closure."""
    packed, xp, zp = pack_params(flat_params, x_dim, z_dim, h_dim)
    packed = tuple(packed)
    h_dim = tuple(h_dim)

    @jax.jit
    def forward(x, eps):
        return _vae_forward_packed(x, eps, packed, x_dim, z_dim, h_dim, xp, zp)

    return forward


# ------------- deterministic parameter init (xavier_normal, zero bias) -------


def _xavier_normal(key, fan_in, fan_out):
    std = (2.0 / (fan_in + fan_out)) ** 0.5
    # Stored as (in, out) == transpose of the PyTorch (out, in) weight.
    return jax.random.normal(key, (fan_in, fan_out), jnp.float32) * std


def init_vae_params(key, x_dim, z_dim, h_dim):
    """Flat list [w, b, ...] in order: enc hidden, mu, log_var, dec hidden, rec."""
    flat = []

    def linear(k, fan_in, fan_out):
        return _xavier_normal(k, fan_in, fan_out), jnp.zeros((1, fan_out), jnp.float32)

    n_layers = 2 * len(h_dim) + 3
    keys = iter(jax.random.split(key, n_layers))

    enc_neurons = [x_dim, *h_dim]
    for i in range(1, len(enc_neurons)):
        flat.extend(linear(next(keys), enc_neurons[i - 1], enc_neurons[i]))

    flat.extend(linear(next(keys), h_dim[-1], z_dim))   # mu head
    flat.extend(linear(next(keys), h_dim[-1], z_dim))   # log_var head

    dec_h = list(reversed(h_dim))
    dec_neurons = [z_dim, *dec_h]
    for i in range(1, len(dec_neurons)):
        flat.extend(linear(next(keys), dec_neurons[i - 1], dec_neurons[i]))

    flat.extend(linear(next(keys), dec_h[-1], x_dim))   # reconstruction
    return flat


# ---------------- pure-JAX references (same math, no Pallas) -----------------


def vae_reference_f32(x, eps, flat, n_enc, n_dec):
    """Exact PyTorch-module math in f32."""
    it = iter(flat)
    h = x
    for i in range(n_enc):
        w, b = next(it), next(it)
        h = h @ w + b
        if i < n_enc - 1:
            h = jnp.maximum(h, 0.0)
    mu = h @ next(it) + next(it)
    log_var = h @ next(it) + next(it)
    z = mu + jnp.exp(0.5 * log_var) * eps
    d = z
    for _ in range(n_dec):
        w, b = next(it), next(it)
        d = jnp.maximum(d @ w + b, 0.0)
    x_hat = jax.nn.sigmoid(d @ next(it) + next(it))
    return x_hat, z, mu, log_var


def vae_reference_bf16(x, eps, flat, n_enc, n_dec):
    """Mirrors the kernel's bf16-operand / f32-accumulate math (incl. bf16 eps)."""
    def mm(a, w):
        return jnp.dot(a.astype(jnp.bfloat16), w.astype(jnp.bfloat16),
                       preferred_element_type=jnp.float32)

    it = iter(flat)
    h = x
    for i in range(n_enc):
        w, b = next(it), next(it)
        h = mm(h, w) + b
        if i < n_enc - 1:
            h = jnp.maximum(h, 0.0)
    mu = mm(h, next(it)) + next(it)
    log_var = mm(h, next(it)) + next(it)
    eps_q = eps.astype(jnp.bfloat16).astype(jnp.float32)
    z = mu + jnp.exp(0.5 * log_var) * eps_q
    d = z
    for _ in range(n_dec):
        w, b = next(it), next(it)
        d = jnp.maximum(mm(d, w) + b, 0.0)
    x_hat = jax.nn.sigmoid(mm(d, next(it)) + next(it))
    return x_hat, z, mu, log_var


if __name__ == "__main__":
    key = jax.random.PRNGKey(0)
    k_x, k_eps, k_params, k_x2, k_eps2 = jax.random.split(key, 5)

    # dims = [x_dim, z_dim, h_dim]  (as in VariationalAutoencoder.__init__)
    B, x_dim, z_dim = 8, 64, 8
    h_dim = [32, 16]

    params = init_vae_params(k_params, x_dim, z_dim, h_dim)
    fwd = make_vae_forward(params, x_dim, z_dim, h_dim)   # weights packed ONCE

    x = jax.random.uniform(k_x, (B, x_dim), jnp.float32)
    eps = jax.random.normal(k_eps, (B, z_dim), jnp.float32)

    x_hat, z, mu, log_var = fwd(x, eps)
    jax.block_until_ready((x_hat, z, mu, log_var))

    n = len(h_dim)

    # Tight check vs. a reference that mirrors the kernel's bf16 math.
    b_out = vae_reference_bf16(x, eps, params, n, n)
    for got, want, name in zip((x_hat, z, mu, log_var), b_out,
                               ("x_hat", "z", "mu", "log_var")):
        assert jnp.allclose(got, want, atol=1e-2), f"{name} mismatch (bf16 ref)"

    # Sanity check vs. exact f32 PyTorch-equivalent math.
    f_out = vae_reference_f32(x, eps, params, n, n)
    for got, want, name in zip((x_hat, z, mu, log_var), f_out,
                               ("x_hat", "z", "mu", "log_var")):
        assert jnp.allclose(got, want, atol=5e-2), f"{name} mismatch (f32 ref)"

    # Multi-tile / batch-padded path (grid > 1; exercises the v7x 2-TC split).
    B2 = 300
    x2 = jax.random.uniform(k_x2, (B2, x_dim), jnp.float32)
    eps2 = jax.random.normal(k_eps2, (B2, z_dim), jnp.float32)
    out2 = fwd(x2, eps2)
    jax.block_until_ready(out2)
    b_out2 = vae_reference_bf16(x2, eps2, params, n, n)
    for got, want, name in zip(out2, b_out2, ("x_hat", "z", "mu", "log_var")):
        assert jnp.allclose(got, want, atol=1e-2), f"{name} mismatch (bf16 ref, B=300)"

    print("KERNEL_OK")
</pallas_src>

<mosaic_0001>
module attributes {stable_mosaic.version = 11 : i64} {
  func.func @_vae_kernel(%arg0: i32, %arg1: memref<16x128xbf16, #tpu.memory_space<vmem>>, %arg2: memref<16x128xbf16, #tpu.memory_space<vmem>>, %arg3: memref<128x128xbf16, #tpu.memory_space<vmem>>, %arg4: memref<1x128xf32, #tpu.memory_space<vmem>>, %arg5: memref<128x128xbf16, #tpu.memory_space<vmem>>, %arg6: memref<1x128xf32, #tpu.memory_space<vmem>>, %arg7: memref<128x256xbf16, #tpu.memory_space<vmem>>, %arg8: memref<1x256xf32, #tpu.memory_space<vmem>>, %arg9: memref<128x128xbf16, #tpu.memory_space<vmem>>, %arg10: memref<1x128xf32, #tpu.memory_space<vmem>>, %arg11: memref<128x128xbf16, #tpu.memory_space<vmem>>, %arg12: memref<1x128xf32, #tpu.memory_space<vmem>>, %arg13: memref<128x128xbf16, #tpu.memory_space<vmem>>, %arg14: memref<1x128xf32, #tpu.memory_space<vmem>>, %arg15: memref<256x128xf32, #tpu.memory_space<vmem>>, %arg16: memref<16x128xbf16, #tpu.memory_space<vmem>>, %arg17: memref<16x128xf32, #tpu.memory_space<vmem>>) attributes {dimension_semantics = [#tpu.dimension_semantics<parallel>], iteration_bounds = array<i64: 1>, scalar_prefetch = 0 : i64, scratch_operands = 0 : i64, tpu.core_type = #tpu.core_type<tc>, window_params = [{transform_indices = @transform_0, window_bounds = array<i64: 16, 128>}, {transform_indices = @transform_1, window_bounds = array<i64: 16, 128>}, {pipeline_mode = #tpu.pipeline_mode<synchronous>, transform_indices = @transform_2, window_bounds = array<i64: 128, 128>}, {pipeline_mode = #tpu.pipeline_mode<synchronous>, transform_indices = @transform_3, window_bounds = array<i64: 1, 128>}, {pipeline_mode = #tpu.pipeline_mode<synchronous>, transform_indices = @transform_4, window_bounds = array<i64: 128, 128>}, {pipeline_mode = #tpu.pipeline_mode<synchronous>, transform_indices = @transform_5, window_bounds = array<i64: 1, 128>}, {pipeline_mode = #tpu.pipeline_mode<synchronous>, transform_indices = @transform_6, window_bounds = array<i64: 128, 256>}, {pipeline_mode = #tpu.pipeline_mode<synchronous>, transform_indices = @transform_7, window_bounds = array<i64: 1, 256>}, {pipeline_mode = #tpu.pipeline_mode<synchronous>, transform_indices = @transform_8, window_bounds = array<i64: 128, 128>}, {pipeline_mode = #tpu.pipeline_mode<synchronous>, transform_indices = @transform_9, window_bounds = array<i64: 1, 128>}, {pipeline_mode = #tpu.pipeline_mode<synchronous>, transform_indices = @transform_10, window_bounds = array<i64: 128, 128>}, {pipeline_mode = #tpu.pipeline_mode<synchronous>, transform_indices = @transform_11, window_bounds = array<i64: 1, 128>}, {pipeline_mode = #tpu.pipeline_mode<synchronous>, transform_indices = @transform_12, window_bounds = array<i64: 128, 128>}, {pipeline_mode = #tpu.pipeline_mode<synchronous>, transform_indices = @transform_13, window_bounds = array<i64: 1, 128>}, {pipeline_mode = #tpu.pipeline_mode<synchronous>, transform_indices = @transform_14, window_bounds = array<i64: 256, 128>}, {transform_indices = @transform_15, window_bounds = array<i64: 16, 128>}, {transform_indices = @transform_16, window_bounds = array<i64: 16, 128>}]} {
    %c0 = arith.constant 0 : index
    %c0_0 = arith.constant 0 : index
    %0 = vector.load %arg1[%c0, %c0_0] : memref<16x128xbf16, #tpu.memory_space<vmem>>, vector<16x128xbf16>
    %c0_1 = arith.constant 0 : index
    %c0_2 = arith.constant 0 : index
    %1 = vector.load %arg3[%c0_1, %c0_2] : memref<128x128xbf16, #tpu.memory_space<vmem>>, vector<128x128xbf16>
    %cst = arith.constant dense<0.000000e+00> : vector<16x128xf32>
    %2 = tpu.matmul %0, %1, %cst {dimension_numbers = #tpu.dot_dimension_numbers<[1], [0], [0], [1], [0, 0, 1, 1], [], []>} : vector<16x128xbf16>, vector<128x128xbf16>, vector<16x128xf32> -> vector<16x128xf32>
    %c0_3 = arith.constant 0 : index
    %c0_4 = arith.constant 0 : index
    %3 = vector.load %arg4[%c0_3, %c0_4] : memref<1x128xf32, #tpu.memory_space<vmem>>, vector<1x128xf32>
    %4 = vector.broadcast %3 : vector<1x128xf32> to vector<16x128xf32>
    %5 = arith.addf %2, %4 : vector<16x128xf32>
    %cst_5 = arith.constant 0.000000e+00 : f32
    %6 = vector.broadcast %cst_5 : f32 to vector<16x128xf32>
    %7 = arith.maximumf %5, %6 : vector<16x128xf32>
    %8 = arith.truncf %7 : vector<16x128xf32> to vector<16x128xbf16>
    %c0_6 = arith.constant 0 : index
    %c0_7 = arith.constant 0 : index
    %9 = vector.load %arg5[%c0_6, %c0_7] : memref<128x128xbf16, #tpu.memory_space<vmem>>, vector<128x128xbf16>
    %cst_8 = arith.constant dense<0.000000e+00> : vector<16x128xf32>
    %10 = tpu.matmul %8, %9, %cst_8 {dimension_numbers = #tpu.dot_dimension_numbers<[1], [0], [0], [1], [0, 0, 1, 1], [], []>} : vector<16x128xbf16>, vector<128x128xbf16>, vector<16x128xf32> -> vector<16x128xf32>
    %c0_9 = arith.constant 0 : index
    %c0_10 = arith.constant 0 : index
    %11 = vector.load %arg6[%c0_9, %c0_10] : memref<1x128xf32, #tpu.memory_space<vmem>>, vector<1x128xf32>
    %12 = vector.broadcast %11 : vector<1x128xf32> to vector<16x128xf32>
    %13 = arith.addf %10, %12 : vector<16x128xf32>
    %14 = arith.truncf %13 : vector<16x128xf32> to vector<16x128xbf16>
    %c0_11 = arith.constant 0 : index
    %c0_12 = arith.constant 0 : index
    %15 = vector.load %arg7[%c0_11, %c0_12] : memref<128x256xbf16, #tpu.memory_space<vmem>>, vector<128x256xbf16>
    %cst_13 = arith.constant dense<0.000000e+00> : vector<16x256xf32>
    %16 = tpu.matmul %14, %15, %cst_13 {dimension_numbers = #tpu.dot_dimension_numbers<[1], [0], [0], [1], [0, 0, 1, 1], [], []>} : vector<16x128xbf16>, vector<128x256xbf16>, vector<16x256xf32> -> vector<16x256xf32>
    %c0_14 = arith.constant 0 : index
    %c0_15 = arith.constant 0 : index
    %17 = vector.load %arg8[%c0_14, %c0_15] : memref<1x256xf32, #tpu.memory_space<vmem>>, vector<1x256xf32>
    %18 = vector.broadcast %17 : vector<1x256xf32> to vector<16x256xf32>
    %19 = arith.addf %16, %18 : vector<16x256xf32>
    %20 = vector.extract_strided_slice %19 {offsets = [0, 0], sizes = [16, 128], strides = [1, 1]} : vector<16x256xf32> to vector<16x128xf32>
    %21 = vector.extract_strided_slice %19 {offsets = [0, 128], sizes = [16, 128], strides = [1, 1]} : vector<16x256xf32> to vector<16x128xf32>
    %cst_16 = arith.constant 5.000000e-01 : f32
    %22 = vector.broadcast %cst_16 : f32 to vector<16x128xf32>
    %23 = arith.mulf %22, %21 : vector<16x128xf32>
    %24 = math.exp %23 : vector<16x128xf32>
    %c0_17 = arith.constant 0 : index
    %c0_18 = arith.constant 0 : index
    %25 = vector.load %arg2[%c0_17, %c0_18] : memref<16x128xbf16, #tpu.memory_space<vmem>>, vector<16x128xbf16>
    %26 = arith.extf %25 : vector<16x128xbf16> to vector<16x128xf32>
    %27 = arith.mulf %24, %26 : vector<16x128xf32>
    %28 = arith.addf %20, %27 : vector<16x128xf32>
    %29 = arith.truncf %28 : vector<16x128xf32> to vector<16x128xbf16>
    %c0_19 = arith.constant 0 : index
    %c0_20 = arith.constant 0 : index
    %30 = vector.load %arg9[%c0_19, %c0_20] : memref<128x128xbf16, #tpu.memory_space<vmem>>, vector<128x128xbf16>
    %cst_21 = arith.constant dense<0.000000e+00> : vector<16x128xf32>
    %31 = tpu.matmul %29, %30, %cst_21 {dimension_numbers = #tpu.dot_dimension_numbers<[1], [0], [0], [1], [0, 0, 1, 1], [], []>} : vector<16x128xbf16>, vector<128x128xbf16>, vector<16x128xf32> -> vector<16x128xf32>
    %c0_22 = arith.constant 0 : index
    %c0_23 = arith.constant 0 : index
    %32 = vector.load %arg10[%c0_22, %c0_23] : memref<1x128xf32, #tpu.memory_space<vmem>>, vector<1x128xf32>
    %33 = vector.broadcast %32 : vector<1x128xf32> to vector<16x128xf32>
    %34 = arith.addf %31, %33 : vector<16x128xf32>
    %cst_24 = arith.constant 0.000000e+00 : f32
    %35 = vector.broadcast %cst_24 : f32 to vector<16x128xf32>
    %36 = arith.maximumf %34, %35 : vector<16x128xf32>
    %37 = arith.truncf %36 : vector<16x128xf32> to vector<16x128xbf16>
    %c0_25 = arith.constant 0 : index
    %c0_26 = arith.constant 0 : index
    %38 = vector.load %arg11[%c0_25, %c0_26] : memref<128x128xbf16, #tpu.memory_space<vmem>>, vector<128x128xbf16>
    %cst_27 = arith.constant dense<0.000000e+00> : vector<16x128xf32>
    %39 = tpu.matmul %37, %38, %cst_27 {dimension_numbers = #tpu.dot_dimension_numbers<[1], [0], [0], [1], [0, 0, 1, 1], [], []>} : vector<16x128xbf16>, vector<128x128xbf16>, vector<16x128xf32> -> vector<16x128xf32>
    %c0_28 = arith.constant 0 : index
    %c0_29 = arith.constant 0 : index
    %40 = vector.load %arg12[%c0_28, %c0_29] : memref<1x128xf32, #tpu.memory_space<vmem>>, vector<1x128xf32>
    %41 = vector.broadcast %40 : vector<1x128xf32> to vector<16x128xf32>
    %42 = arith.addf %39, %41 : vector<16x128xf32>
    %cst_30 = arith.constant 0.000000e+00 : f32
    %43 = vector.broadcast %cst_30 : f32 to vector<16x128xf32>
    %44 = arith.maximumf %42, %43 : vector<16x128xf32>
    %45 = arith.truncf %44 : vector<16x128xf32> to vector<16x128xbf16>
    %c0_31 = arith.constant 0 : index
    %c0_32 = arith.constant 0 : index
    %46 = vector.load %arg13[%c0_31, %c0_32] : memref<128x128xbf16, #tpu.memory_space<vmem>>, vector<128x128xbf16>
    %cst_33 = arith.constant dense<0.000000e+00> : vector<16x128xf32>
    %47 = tpu.matmul %45, %46, %cst_33 {dimension_numbers = #tpu.dot_dimension_numbers<[1], [0], [0], [1], [0, 0, 1, 1], [], []>} : vector<16x128xbf16>, vector<128x128xbf16>, vector<16x128xf32> -> vector<16x128xf32>
    %c0_34 = arith.constant 0 : index
    %c0_35 = arith.constant 0 : index
    %48 = vector.load %arg14[%c0_34, %c0_35] : memref<1x128xf32, #tpu.memory_space<vmem>>, vector<1x128xf32>
    %49 = vector.broadcast %48 : vector<1x128xf32> to vector<16x128xf32>
    %50 = arith.addf %47, %49 : vector<16x128xf32>
    %51 = math.absf %50 : vector<16x128xf32>
    %cst_36 = arith.constant 0.000000e+00 : f32
    %52 = vector.broadcast %cst_36 : f32 to vector<16x128xf32>
    %53 = arith.subf %52, %51 : vector<16x128xf32>
    %54 = math.exp %53 : vector<16x128xf32>
    %cst_37 = arith.constant 0.000000e+00 : f32
    %55 = vector.broadcast %cst_37 : f32 to vector<16x128xf32>
    %56 = arith.cmpf oge, %50, %55 : vector<16x128xf32>
    %cst_38 = arith.constant 1.000000e+00 : f32
    %57 = vector.broadcast %cst_38 : f32 to vector<16x128xf32>
    %58 = arith.select %56, %57, %54 : vector<16x128xi1>, vector<16x128xf32>
    %cst_39 = arith.constant 1.000000e+00 : f32
    %59 = vector.broadcast %cst_39 : f32 to vector<16x128xf32>
    %60 = arith.addf %59, %54 : vector<16x128xf32>
    %61 = tpu.reciprocal %60 {approx = true} : vector<16x128xf32> -> vector<16x128xf32>
    %62 = arith.mulf %58, %61 : vector<16x128xf32>
    %63 = arith.truncf %62 : vector<16x128xf32> to vector<16x128xbf16>
    %c0_40 = arith.constant 0 : index
    %c0_41 = arith.constant 0 : index
    %64 = vector.load %arg16[%c0_40, %c0_41] : memref<16x128xbf16, #tpu.memory_space<vmem>>, vector<16x128xbf16>
    tpu.vector_store %arg16[%c0_40, %c0_41], %63 {strides = array<i32>} : memref<16x128xbf16, #tpu.memory_space<vmem>>, vector<16x128xbf16>,
    %c0_42 = arith.constant 0 : index
    %c0_43 = arith.constant 0 : index
    %65 = vector.load %arg15[%c0_42, %c0_43] : memref<256x128xf32, #tpu.memory_space<vmem>>, vector<256x128xf32>
    %cst_44 = arith.constant dense<0.000000e+00> : vector<16x128xf32>
    %66 = tpu.matmul %19, %65, %cst_44 {dimension_numbers = #tpu.dot_dimension_numbers<[1], [0], [0], [1], [0, 0, 1, 1], [], []>} : vector<16x256xf32>, vector<256x128xf32>, vector<16x128xf32> -> vector<16x128xf32>
    %67 = arith.addf %28, %66 : vector<16x128xf32>
    %c0_45 = arith.constant 0 : index
    %c0_46 = arith.constant 0 : index
    %68 = vector.load %arg17[%c0_45, %c0_46] : memref<16x128xf32, #tpu.memory_space<vmem>>, vector<16x128xf32>
    tpu.vector_store %arg17[%c0_45, %c0_46], %67 {strides = array<i32>} : memref<16x128xf32, #tpu.memory_space<vmem>>, vector<16x128xf32>,
    return
  }
  func.func @transform_0(%arg0: i32) -> (i32, i32) {
    %c0_i32 = arith.constant 0 : i32
    %c0_i32_0 = arith.constant 0 : i32
    return %arg0, %c0_i32 : i32, i32
  }
  func.func @transform_1(%arg0: i32) -> (i32, i32) {
    %c0_i32 = arith.constant 0 : i32
    %c0_i32_0 = arith.constant 0 : i32
    return %arg0, %c0_i32 : i32, i32
  }
  func.func @transform_2(%arg0: i32) -> (i32, i32) {
    %c0_i32 = arith.constant 0 : i32
    %c0_i32_0 = arith.constant 0 : i32
    %c0_i32_1 = arith.constant 0 : i32
    return %c0_i32, %c0_i32_0 : i32, i32
  }
  func.func @transform_3(%arg0: i32) -> (i32, i32) {
    %c0_i32 = arith.constant 0 : i32
    %c0_i32_0 = arith.constant 0 : i32
    %c0_i32_1 = arith.constant 0 : i32
    return %c0_i32, %c0_i32_0 : i32, i32
  }
  func.func @transform_4(%arg0: i32) -> (i32, i32) {
    %c0_i32 = arith.constant 0 : i32
    %c0_i32_0 = arith.constant 0 : i32
    %c0_i32_1 = arith.constant 0 : i32
    return %c0_i32, %c0_i32_0 : i32, i32
  }
  func.func @transform_5(%arg0: i32) -> (i32, i32) {
    %c0_i32 = arith.constant 0 : i32
    %c0_i32_0 = arith.constant 0 : i32
    %c0_i32_1 = arith.constant 0 : i32
    return %c0_i32, %c0_i32_0 : i32, i32
  }
  func.func @transform_6(%arg0: i32) -> (i32, i32) {
    %c0_i32 = arith.constant 0 : i32
    %c0_i32_0 = arith.constant 0 : i32
    %c0_i32_1 = arith.constant 0 : i32
    return %c0_i32, %c0_i32_0 : i32, i32
  }
  func.func @transform_7(%arg0: i32) -> (i32, i32) {
    %c0_i32 = arith.constant 0 : i32
    %c0_i32_0 = arith.constant 0 : i32
    %c0_i32_1 = arith.constant 0 : i32
    return %c0_i32, %c0_i32_0 : i32, i32
  }
  func.func @transform_8(%arg0: i32) -> (i32, i32) {
    %c0_i32 = arith.constant 0 : i32
    %c0_i32_0 = arith.constant 0 : i32
    %c0_i32_1 = arith.constant 0 : i32
    return %c0_i32, %c0_i32_0 : i32, i32
  }
  func.func @transform_9(%arg0: i32) -> (i32, i32) {
    %c0_i32 = arith.constant 0 : i32
    %c0_i32_0 = arith.constant 0 : i32
    %c0_i32_1 = arith.constant 0 : i32
    return %c0_i32, %c0_i32_0 : i32, i32
  }
  func.func @transform_10(%arg0: i32) -> (i32, i32) {
    %c0_i32 = arith.constant 0 : i32
    %c0_i32_0 = arith.constant 0 : i32
    %c0_i32_1 = arith.constant 0 : i32
    return %c0_i32, %c0_i32_0 : i32, i32
  }
  func.func @transform_11(%arg0: i32) -> (i32, i32) {
    %c0_i32 = arith.constant 0 : i32
    %c0_i32_0 = arith.constant 0 : i32
    %c0_i32_1 = arith.constant 0 : i32
    return %c0_i32, %c0_i32_0 : i32, i32
  }
  func.func @transform_12(%arg0: i32) -> (i32, i32) {
    %c0_i32 = arith.constant 0 : i32
    %c0_i32_0 = arith.constant 0 : i32
    %c0_i32_1 = arith.constant 0 : i32
    return %c0_i32, %c0_i32_0 : i32, i32
  }
  func.func @transform_13(%arg0: i32) -> (i32, i32) {
    %c0_i32 = arith.constant 0 : i32
    %c0_i32_0 = arith.constant 0 : i32
    %c0_i32_1 = arith.constant 0 : i32
    return %c0_i32, %c0_i32_0 : i32, i32
  }
  func.func @transform_14(%arg0: i32) -> (i32, i32) {
    %c0_i32 = arith.constant 0 : i32
    %c0_i32_0 = arith.constant 0 : i32
    %c0_i32_1 = arith.constant 0 : i32
    return %c0_i32, %c0_i32_0 : i32, i32
  }
  func.func @transform_15(%arg0: i32) -> (i32, i32) {
    %c0_i32 = arith.constant 0 : i32
    %c0_i32_0 = arith.constant 0 : i32
    return %arg0, %c0_i32 : i32, i32
  }
  func.func @transform_16(%arg0: i32) -> (i32, i32) {
    %c0_i32 = arith.constant 0 : i32
    %c0_i32_0 = arith.constant 0 : i32
    return %arg0, %c0_i32 : i32, i32
  }
}

</mosaic_0001>

<bundles_post_ra>
// kernel: forward.1
= control target key start
LH: loop header
LB: loop body
LE: loop exit
PB: predicated region body
PF: predicated region fallthrough
CT: control target
= control target key end

     0   :  { %s1585_s0 = inlined_call_operand.vmem [shape: bf16[16,128], index: 0, kind: input, shape index: {}]   ;;  %s1586_s1 = inlined_call_operand.vmem [shape: bf16[16,128], index: 1, kind: input, shape index: {}]   ;;  %s1587_s2 = inlined_call_operand.hbm [shape: bf16[128,128], index: 2, kind: input, shape index: {}]   ;;  %s1588_s3 = inlined_call_operand.vmem [shape: f32[1,128], index: 3, kind: input, shape index: {}, may-alias: {3,5,9,11,13}]   ;;  %s1589_s4 = inlined_call_operand.hbm [shape: bf16[128,128], index: 4, kind: input, shape index: {}]   ;;  %s1590_s5 = inlined_call_operand.vmem [shape: f32[1,128], index: 5, kind: input, shape index: {}, may-alias: {3,5,9,11,13}]   ;;  %s1591_s6 = inlined_call_operand.hbm [shape: bf16[128,256], index: 6, kind: input, shape index: {}]   ;;  %s1592_s7 = inlined_call_operand.vmem [shape: f32[1,256], index: 7, kind: input, shape index: {}]   ;;  %s1593_s8 = inlined_call_operand.hbm [shape: bf16[128,128], index: 8, kind: input, shape index: {}]   ;;  %s1594_s9 = inlined_call_operand.vmem [shape: f32[1,128], index: 9, kind: input, shape index: {}, may-alias: {3,5,9,11,13}]   ;;  %s1595_s10 = inlined_call_operand.hbm [shape: bf16[128,128], index: 10, kind: input, shape index: {}]   ;;  %s1596_s11 = inlined_call_operand.vmem [shape: f32[1,128], index: 11, kind: input, shape index: {}, may-alias: {3,5,9,11,13}]   ;;  %s1597_s12 = inlined_call_operand.hbm [shape: bf16[128,128], index: 12, kind: input, shape index: {}]   ;;  %s1598_s13 = inlined_call_operand.vmem [shape: f32[1,128], index: 13, kind: input, shape index: {}, may-alias: {3,5,9,11,13}]   ;;  %s1599_s14 = inlined_call_operand.hbm [shape: f32[256,128], index: 14, kind: input, shape index: {}]   ;;  %s1600_s15 = inlined_call_operand.vmem [shape: bf16[16,128], index: 15, kind: output, shape index: {0}]   ;;  %s1601_s16 = inlined_call_operand.vmem [shape: f32[16,128], index: 16, kind: output, shape index: {1}]  }
   0x1   :  { %1602 = sst [smem:[#allocation17_spill]] %s1585_s0 }
   0x2   :  { %22 = vsyncpa [#allocation3], 0 }
   0x3   :  { %23 = vsyncpa [#allocation5], 0 }
   0x4   :  { %24 = vsyncpa [#allocation8], 0 }
   0x5   :  { %25 = vsyncpa [#allocation11], 0  ;;  %s49_s23 = sshll.u32 %s1589_s4, 4  ;;  %s1364_s24 = smov [#allocation4]   ;;  %s50_s23 = int_to_ptr.hbm [resolvable:$true] %s49_s23 }
   0x6   :  { %s51_s25 = sshll.u32 %s1364_s24, 4  ;;  %s79_s28 = sshll.u32 %s1593_s8, 4  ;;  %s52_s25 = int_to_ptr.vmem [resolvable:$true] %s51_s25  ;;  %s80_s28 = int_to_ptr.hbm [resolvable:$true] %s79_s28 }
   0x7   :  { %s1365_s29 = smov 64   ;;  %s1366_s30 = smov 4  }
   0x8   :  { %57 = dma.hbm_to_vmem [thread:$0]  %s50_s23, 1024, %s52_s25, [#allocation5], %s1365_s29, %s1365_s29, %s1366_s30  }
   0x9   :  { %s1367_s0 = smov [#allocation7]   ;;  %s109_s4 = sshll.u32 %s1597_s12, 4  ;;  %s110_s4 = int_to_ptr.hbm [resolvable:$true] %s109_s4 }
   0xa   :  { %s81_s17 = sshll.u32 %s1367_s0, 4  ;;  %s34_s21 = sshll.u32 %s1587_s2, 4  ;;  %s82_s17 = int_to_ptr.vmem [resolvable:$true] %s81_s17  ;;  %s35_s21 = int_to_ptr.hbm [resolvable:$true] %s34_s21 }
   0xb   :  { %87 = dma.hbm_to_vmem [thread:$0]  %s80_s28, 1024, %s82_s17, [#allocation8], %s1365_s29, %s1365_s29, %s1366_s30  }
   0xc   :  { %s1368_s22 = smov [#allocation10]   ;;  %s1369_s23 = smov [#allocation2]  }
   0xd   :  { %s111_s24 = sshll.u32 %s1368_s22, 4  ;;  %s36_s12 = sshll.u32 %s1369_s23, 4  ;;  %s112_s24 = int_to_ptr.vmem [resolvable:$true] %s111_s24  ;;  %s37_s12 = int_to_ptr.vmem [resolvable:$true] %s36_s12 }
   0xe   :  { %117 = dma.hbm_to_vmem [thread:$0]  %s110_s4, 1024, %s112_s24, [#allocation11], %s1365_s29, %s1365_s29, %s1366_s30  }
   0xf   :  { %s64_s27 = sshll.u32 %s1591_s6, 4  ;;  %s1370_s2 = smov [#allocation6]   ;;  %s65_s27 = int_to_ptr.hbm [resolvable:$true] %s64_s27 }
  0x10   :  { %42 = dma.hbm_to_vmem [thread:$0]  %s35_s21, 1024, %s37_s12, [#allocation3], %s1365_s29, %s1365_s29, %s1366_s30  }
  0x11   :  { %s66_s28 = sshll.u32 %s1370_s2, 4  ;;  %s94_s18 = sshll.u32 %s1595_s10, 4  ;;  %s67_s28 = int_to_ptr.vmem [resolvable:$true] %s66_s28  ;;  %s95_s18 = int_to_ptr.hbm [resolvable:$true] %s94_s18 }
  0x12   :  { %s1371_s19 = smov 128   ;;  %s1372_s4 = smov 8  }
  0x13   :  { %72 = dma.hbm_to_vmem [thread:$0]  %s65_s27, 2048, %s67_s28, [#allocation5], %s1371_s19, %s1371_s19, %s1372_s4  }
  0x14   :  { %s1373_s8 = smov [#allocation9]   ;;  %s124_s24 = sshll.u32 %s1599_s14, 4  ;;  %s125_s24 = int_to_ptr.hbm [resolvable:$true] %s124_s24 }
  0x15   :  { %s96_s20 = sshll.u32 %s1373_s8, 4  ;;  %s1374_s21 = smov [#allocation12]   ;;  %s97_s20 = int_to_ptr.vmem [resolvable:$true] %s96_s20 }
  0x16   :  { %102 = dma.hbm_to_vmem [thread:$0]  %s95_s18, 1024, %s97_s20, [#allocation8], %s1365_s29, %s1365_s29, %s1366_s30  }
  0x17   :  { %s126_s23 = sshll.u32 %s1374_s21, 4  ;;  %s127_s23 = int_to_ptr.vmem [resolvable:$true] %s126_s23 }
  0x18   :  { %132 = dma.hbm_to_vmem [thread:$0]  %s125_s24, 4096, %s127_s23, [#allocation11], %s1371_s19, %s1371_s19, %s1372_s4  }
  0x19   :  { %1356 = dma.done.wait [#allocation3], 1024  }
  0x1a   :  { %1357 = vsyncadd [#allocation3], 4294966272 }
  0x1b   :  { %1358 = dma.done.wait [#allocation5], 3072  }
  0x1c   :  { %1359 = vsyncadd [#allocation5], 4294964224 }
  0x1d   :  { %1360 = dma.done.wait [#allocation8], 2048  }
  0x1e   :  { %1361 = vsyncadd [#allocation8], 4294965248 }
  0x1f   :  { %1362 = dma.done.wait [#allocation11], 5120  }
  0x20   :  { %1363 = vsyncadd [#allocation11], 4294962176  ;;  %v1086_v0 = vld [vmem:[#allocation2 + $0x38] sm:$0xff]  ;;  %v1085_v1 = vld [vmem:[#allocation2 + $0x30] sm:$0xff]  ;;  %s1603_s29 = sld [smem:[#allocation17_spill]] }
  0x21   :  { %237 = vmatpush.bf16.msra.mxu0 %v1086_v0  ;;  %v1094_v2 = vld [vmem:[#allocation4 + $0x38] sm:$0xff]  ;;  %v1093_v3 = vld [vmem:[#allocation4 + $0x30] sm:$0xff]  ;;  %v1084_v4 = vld [vmem:[#allocation2 + $0x28] sm:$0xff] }
  0x22   :  { %322 = vmatpush.bf16.msra.mxu1 %v1094_v2  ;;  %v1092_v5 = vld [vmem:[#allocation4 + $0x28] sm:$0xff]  ;;  %v1083_v6 = vld [vmem:[#allocation2 + $0x20] sm:$0xff]  ;;  %v1082_v8 = vld [vmem:[#allocation2 + $0x18] sm:$0xff] }
  0x23   :  { %v1091_v7 = vld [vmem:[#allocation4 + $0x20] sm:$0xff]  ;;  %v1081_v9 = vld [vmem:[#allocation2 + $0x10] sm:$0xff]  ;;  %v1080_v10 = vld [vmem:[#allocation2 + $0x8] sm:$0xff] }
  0x24   :  { %v1079_v11 = vld [vmem:[#allocation2] sm:$0xff]  ;;  %v1090_v13 = vld [vmem:[#allocation4 + $0x18] sm:$0xff]  ;;  %v1089_v14 = vld [vmem:[#allocation4 + $0x10] sm:$0xff] }
  0x25   :  { %238 = vmatpush.bf16.msra.mxu0 %v1085_v1  ;;  %v1088_v15 = vld [vmem:[#allocation4 + $0x8] sm:$0xff]  ;;  %v1087_v16 = vld [vmem:[#allocation4] sm:$0xff]  ;;  %v976_v17 = vld [vmem:[#allocation6 + $0x70] sm:$0xf] }
  0x26   :  { %323 = vmatpush.bf16.msra.mxu1 %v1093_v3  ;;  %v1078_v12 = vld [vmem:[%s1603_s29] sm:$0xff]  ;;  %v1110_v18 = vld [vmem:[#allocation6 + $0x74] sm:$0xf0]  ;;  %v1109_v19 = vld [vmem:[#allocation6 + $0x74] sm:$0xf] }
  0x27   :  { %v977_v20 = vor.u32 %v1110_v18, %v976_v17  ;;  %v978_v21 = vld [vmem:[#allocation6 + $0x78] sm:$0xf0]  ;;  %v968_v22 = vld [vmem:[#allocation6 + $0x60] sm:$0xf]  ;;  %v1108_v23 = vld [vmem:[#allocation6 + $0x64] sm:$0xf0] }
  0x28   :  { %v981_v24 = vor.u32 %v1109_v19, %v978_v21  ;;  %v1107_v25 = vld [vmem:[#allocation6 + $0x64] sm:$0xf]  ;;  %v970_v26 = vld [vmem:[#allocation6 + $0x68] sm:$0xf0]  ;;  %v969_v27 = vor.u32 %v1108_v23, %v968_v22  ;;  %v960_v29 = vld [vmem:[#allocation6 + $0x50] sm:$0xf] }
  0x29   :  { %239 = vmatpush.bf16.msra.mxu0 %v1084_v4  ;;  %439 = vmatpush.bf16.msra.mxu2 %v977_v20  ;;  %v973_v28 = vor.u32 %v1107_v25, %v970_v26  ;;  %v1106_v30 = vld [vmem:[#allocation6 + $0x54] sm:$0xf0]  ;;  %v1105_v31 = vld [vmem:[#allocation6 + $0x54] sm:$0xf]  ;;  %v962_v32 = vld [vmem:[#allocation6 + $0x58] sm:$0xf0] }
  0x2a   :  { %324 = vmatpush.bf16.msra.mxu1 %v1092_v5  ;;  %453 = vmatpush.bf16.msra.mxu3 %v981_v24  ;;  %v961_v33 = vor.u32 %v1106_v30, %v960_v29  ;;  %v965_v34 = vor.u32 %v1105_v31, %v962_v32  ;;  %v952_v35 = vld [vmem:[#allocation6 + $0x40] sm:$0xf]  ;;  %v1104_v36 = vld [vmem:[#allocation6 + $0x44] sm:$0xf0]  ;;  %v1103_v37 = vld [vmem:[#allocation6 + $0x44] sm:$0xf] }
  0x2b   :  { %v954_v38 = vld [vmem:[#allocation6 + $0x48] sm:$0xf0]  ;;  %v953_v39 = vor.u32 %v1104_v36, %v952_v35  ;;  %v944_v41 = vld [vmem:[#allocation6 + $0x30] sm:$0xf]  ;;  %v1102_v42 = vld [vmem:[#allocation6 + $0x34] sm:$0xf0] }
  0x2c   :  { %v957_v40 = vor.u32 %v1103_v37, %v954_v38  ;;  %v1101_v43 = vld [vmem:[#allocation6 + $0x34] sm:$0xf]  ;;  %v946_v44 = vld [vmem:[#allocation6 + $0x38] sm:$0xf0]  ;;  %v945_v45 = vor.u32 %v1102_v42, %v944_v41  ;;  %v1171_v48 = vld [vmem:[%s1588_s3] ss:$0 sm:$0xff] }
  0x2d   :  { %240 = vmatpush.bf16.msra.mxu0 %v1083_v6  ;;  %440 = vmatpush.bf16.msra.mxu2 %v969_v27  ;;  %v949_v46 = vor.u32 %v1101_v43, %v946_v44  ;;  %v936_v55 = vld [vmem:[#allocation6 + $0x20] sm:$0xf]  ;;  %v1100_v56 = vld [vmem:[#allocation6 + $0x24] sm:$0xf0]  ;;  %v1099_v57 = vld [vmem:[#allocation6 + $0x24] sm:$0xf] }
  0x2e   :  { %325 = vmatpush.bf16.msra.mxu1 %v1091_v7  ;;  %454 = vmatpush.bf16.msra.mxu3 %v973_v28  ;;  %v937_v58 = vor.u32 %v1100_v56, %v936_v55  ;;  %v938_v59 = vld [vmem:[#allocation6 + $0x28] sm:$0xf0]  ;;  %v928_v61 = vld [vmem:[#allocation6 + $0x10] sm:$0xf]  ;;  %v1098_v62 = vld [vmem:[#allocation6 + $0x14] sm:$0xf0] }
  0x2f   :  { %v941_v60 = vor.u32 %v1099_v57, %v938_v59  ;;  %v1097_v63 = vld [vmem:[#allocation6 + $0x14] sm:$0xf]  ;;  %v929_v0 = vor.u32 %v1098_v62, %v928_v61  ;;  %v930_v1 = vld [vmem:[#allocation6 + $0x18] sm:$0xf0]  ;;  %v920_v3 = vld [vmem:[#allocation6] sm:$0xf] }
  0x30   :  { %v933_v2 = vor.u32 %v1097_v63, %v930_v1  ;;  %v1096_v4 = vld [vmem:[#allocation6 + $0x4] sm:$0xf0]  ;;  %v1095_v5 = vld [vmem:[#allocation6 + $0x4] sm:$0xf]  ;;  %v922_v7 = vld [vmem:[#allocation6 + $0x8] sm:$0xf0] }
  0x31   :  { %241 = vmatpush.bf16.msra.mxu0 %v1082_v8  ;;  %441 = vmatpush.bf16.msra.mxu2 %v961_v33  ;;  %v921_v6 = vor.u32 %v1096_v4, %v920_v3  ;;  %v925_v8 = vor.u32 %v1095_v5, %v922_v7  ;;  %v1116_v17 = vld [vmem:[#allocation7 + $0x28] sm:$0xff]  ;;  %v764_v19 = vld [vmem:[#allocation12 + $0x40] sm:$0xff]  ;;  %v763_v21 = vld [vmem:[#allocation12 + $0x38] sm:$0xff] }
  0x32   :  { %326 = vmatpush.bf16.msra.mxu1 %v1090_v13  ;;  %455 = vmatpush.bf16.msra.mxu3 %v965_v34  ;;  %v768_v13 = vld [vmem:[#allocation12 + $0x60] sm:$0xff]  ;;  %v765_v18 = vld [vmem:[#allocation12 + $0x48] sm:$0xff]  ;;  %v762_v22 = vld [vmem:[#allocation12 + $0x30] sm:$0xff] }
  0x33   :  { %v1115_v20 = vld [vmem:[#allocation7 + $0x20] sm:$0xff]  ;;  %v761_v23 = vld [vmem:[#allocation12 + $0x28] sm:$0xff]  ;;  %v759_v26 = vld [vmem:[#allocation12 + $0x18] sm:$0xff] }
  0x34   :  { %v760_v25 = vld [vmem:[#allocation12 + $0x20] sm:$0xff]  ;;  %v758_v28 = vld [vmem:[#allocation12 + $0x10] sm:$0xff]  ;;  %v1114_v33 = vld [vmem:[#allocation7 + $0x18] sm:$0xff] }
  0x35   :  { %242 = vmatpush.bf16.msra.mxu0 %v1081_v9  ;;  %442 = vmatpush.bf16.msra.mxu2 %v953_v39  ;;  %v771_v9 = vld [vmem:[#allocation12 + $0x78] sm:$0xff]  ;;  %v1172_v27 = vld [vmem:[%s1590_s5] ss:$0 sm:$0xff]  ;;  %v757_v34 = vld [vmem:[#allocation12 + $0x8] sm:$0xff] }
  0x36   :  { %327 = vmatpush.bf16.msra.mxu1 %v1089_v14  ;;  %456 = vmatpush.bf16.msra.mxu3 %v957_v40  ;;  %v1117_v14 = vld [vmem:[#allocation7 + $0x30] sm:$0xff]  ;;  %v756_v35 = vld [vmem:[#allocation12] sm:$0xff]  ;;  %v1112_v37 = vld [vmem:[#allocation7 + $0x8] sm:$0xff] }
  0x37   :  { %v1113_v36 = vld [vmem:[#allocation7 + $0x10] sm:$0xff]  ;;  %v1111_v38 = vld [vmem:[#allocation7] sm:$0xff]  ;;  %v1505_v39 = vld [vmem:[#allocation12 + $0xf8] sm:$0xff] }
  0x38   :  { %v1508_v40 = vld [vmem:[#allocation12 + $0xf0] sm:$0xff]  ;;  %v1511_v41 = vld [vmem:[#allocation12 + $0xe8] sm:$0xff]  ;;  %v1513_v42 = vld [vmem:[#allocation12 + $0xe0] sm:$0xff] }
  0x39   :  { %243 = vmatpush.bf16.msra.mxu0 %v1080_v10  ;;  %443 = vmatpush.bf16.msra.mxu2 %v945_v45  ;;  %v770_v10 = vld [vmem:[#allocation12 + $0x70] sm:$0xff]  ;;  %v1516_v43 = vld [vmem:[#allocation12 + $0xd8] sm:$0xff]  ;;  %v1522_v45 = vld [vmem:[#allocation12 + $0xc8] sm:$0xff] }
  0x3a   :  { %328 = vmatpush.bf16.msra.mxu1 %v1088_v15  ;;  %457 = vmatpush.bf16.msra.mxu3 %v949_v46  ;;  %v767_v15 = vld [vmem:[#allocation12 + $0x58] sm:$0xff]  ;;  %v1519_v44 = vld [vmem:[#allocation12 + $0xd0] sm:$0xff]  ;;  %v1525_v46 = vld [vmem:[#allocation12 + $0xc0] sm:$0xff] }
  0x3b   :  { %v1540_v55 = vld [vmem:[#allocation12 + $0xa0] sm:$0xff]  ;;  %v773_v61 = vld [vmem:[#allocation12 + $0x88] sm:$0xff]  ;;  %v1126_v5 = vld [vmem:[#allocation9 + $0x38] sm:$0xff] }
  0x3c   :  { %v772_v1 = vld [vmem:[#allocation12 + $0x80] sm:$0xff] }
  0x3d   :  { %244 = vmatpush.bf16.msra.mxu0 %v1079_v11  ;;  %444 = vmatpush.bf16.msra.mxu2 %v937_v58  ;;  %v769_v11 = vld [vmem:[#allocation12 + $0x68] sm:$0xff]  ;;  %v775_v58 = vld [vmem:[#allocation12 + $0x98] sm:$0xff]  ;;  %v1136_v7 = vld [vmem:[%s1586_s1] sm:$0xff]  }
  0x3e   :  { %329 = vmatpush.bf16.msra.mxu1 %v1087_v16  ;;  %458 = vmatpush.bf16.msra.mxu3 %v941_v60  ;;  %v766_v16 = vld [vmem:[#allocation12 + $0x50] sm:$0xff] }
  0x3f   :  { %v774_v60 = vld [vmem:[#allocation12 + $0x90] sm:$0xff] }
  0x40   :  { %245 = vmatmul.bf16.vlgmr.msra.gmra.mxu0 %v1078_v12  ;;  %v1118_v12 = vld [vmem:[#allocation7 + $0x38] sm:$0xff] }
  0x41   :  { %445 = vmatpush.bf16.msra.mxu2 %v929_v0  ;;  %550 = vmatpush.bf16.msrb.mxu0 %v1118_v12  ;;  %v1124_v12 = vld [vmem:[#allocation9 + $0x28] sm:$0xff] }
  0x42   :  { %459 = vmatpush.bf16.msra.mxu3 %v933_v2  ;;  %635 = vmatpush.bf16.msrb.mxu1 %v1126_v5 }
  0x45   :  { %446 = vmatpush.bf16.msra.mxu2 %v921_v6  ;;  %551 = vmatpush.bf16.msrb.mxu0 %v1117_v14 }
  0x46   :  { %460 = vmatpush.bf16.msra.mxu3 %v925_v8  ;;  %v1125_v8 = vld [vmem:[#allocation9 + $0x30] sm:$0xff] }
  0x47   :  { %636 = vmatpush.bf16.msrb.mxu1 %v1125_v8 }
  0x49   :  { %552 = vmatpush.bf16.msrb.mxu0 %v1116_v17 }
  0x4a   :  { %788 = vmatpush.msrb.mxu3 %v771_v9  ;;  %v1137_v9 = vunpack.c.l.bf16 %v1136_v7 }
  0x4b   :  { %637 = vmatpush.bf16.msrb.mxu1 %v1124_v12 }
  0x4c   :  { %789 = vmatpush.msrb.mxu3 %v770_v10 }
  0x4d   :  { %553 = vmatpush.bf16.msrb.mxu0 %v1115_v20  ;;  %v1122_v20 = vld [vmem:[#allocation9 + $0x18] sm:$0xff] }
  0x4e   :  { %790 = vmatpush.msrb.mxu3 %v769_v11  ;;  %v1138_v11 = vunpack.c.h.bf16 %v1136_v7 }
  0x50   :  { %791 = vmatpush.msrb.mxu3 %v768_v13 }
  0x51   :  { %554 = vmatpush.bf16.msrb.mxu0 %v1114_v33 }
  0x52   :  { %792 = vmatpush.msrb.mxu3 %v767_v15 }
  0x54   :  { %793 = vmatpush.msrb.mxu3 %v766_v16 }
  0x55   :  { %555 = vmatpush.bf16.msrb.mxu0 %v1113_v36 }
  0x56   :  { %794 = vmatpush.msrb.mxu3 %v765_v18 }
  0x58   :  { %795 = vmatpush.msrb.mxu3 %v764_v19  ;;  %v1123_v19 = vld [vmem:[#allocation9 + $0x20] sm:$0xff] }
  0x59   :  { %556 = vmatpush.bf16.msrb.mxu0 %v1112_v37  ;;  %638 = vmatpush.bf16.msrb.mxu1 %v1123_v19 }
  0x5a   :  { %796 = vmatpush.msrb.mxu3 %v763_v21  ;;  %v1121_v21 = vld [vmem:[#allocation9 + $0x10] sm:$0xff] }
  0x5c   :  { %797 = vmatpush.msrb.mxu3 %v762_v22  ;;  %v1120_v22 = vld [vmem:[#allocation9 + $0x8] sm:$0xff] }
  0x5d   :  { %557 = vmatpush.bf16.msrb.mxu0 %v1111_v38  ;;  %639 = vmatpush.bf16.msrb.mxu1 %v1122_v20 }
  0x5e   :  { %798 = vmatpush.msrb.mxu3 %v761_v23  ;;  %v1119_v23 = vld [vmem:[#allocation9] sm:$0xff] }
  0x60   :  { %799 = vmatpush.msrb.mxu3 %v760_v25 }
  0x61   :  { %811 = vmatpush.msra.mxu0 %v1505_v39  ;;  %640 = vmatpush.bf16.msrb.mxu1 %v1121_v21 }
  0x62   :  { %800 = vmatpush.msrb.mxu3 %v759_v26  ;;  %v1133_v26 = vld [vmem:[#allocation10 + $0x30] sm:$0xff] }
  0x63   :  { %812 = vmatpush.msra.mxu0 %v1508_v40 }
  0x64   :  { %801 = vmatpush.msrb.mxu3 %v758_v28  ;;  %v1132_v28 = vld [vmem:[#allocation10 + $0x28] sm:$0xff] }
  0x65   :  { %813 = vmatpush.msra.mxu0 %v1511_v41  ;;  %641 = vmatpush.bf16.msrb.mxu1 %v1120_v22 }
  0x66   :  { %802 = vmatpush.msrb.mxu3 %v757_v34 }
  0x67   :  { %814 = vmatpush.msra.mxu0 %v1513_v42 }
  0x68   :  { %803 = vmatpush.msrb.mxu3 %v756_v35 }
  0x69   :  { %815 = vmatpush.msra.mxu0 %v1516_v43  ;;  %642 = vmatpush.bf16.msrb.mxu1 %v1119_v23 }
  0x6b   :  { %816 = vmatpush.msra.mxu0 %v1519_v44 }
  0x6d   :  { %817 = vmatpush.msra.mxu0 %v1522_v45 }
  0x6f   :  { %818 = vmatpush.msra.mxu0 %v1525_v46 }
  0xbd   :  { %v246_v47 = vpop.f32.mrf.mxu0 }
  0xbe   :  { %v247_v49 = vadd.f32 %v1171_v48, %v246_v47  ;;  %v353_v47 = vld [vmem:[%s1592_s7] sm:$0x3] }
  0xc0   :  { %v251_v52 = vmax.f32 %v247_v49, 0.0  ;;  %v1534_v49 = vld [vmem:[#allocation12 + $0xb0] sm:$0xff] }
  0xc5   :  { %v248_v50 = vpop.f32.mrf.mxu0 }
  0xc6   :  { %v249_v51 = vadd.f32 %v1171_v48, %v248_v50  ;;  %v1532_v48 = vld [vmem:[#allocation12 + $0xb8] sm:$0xff]  ;;  %v355_v50 = vperm.slane %v353_v47, 0 }
  0xc7   :  { %819 = vmatpush.msra.mxu0 %v1532_v48 }
  0xc8   :  { %v252_v53 = vmax.f32 %v249_v51, 0.0  ;;  %v356_v51 = vperm.slane %v353_v47, 1 }
  0xc9   :  { %820 = vmatpush.msra.mxu0 %v1534_v49 }
  0xca   :  { %v253_v54 = vpack.c.bf16 %v252_v53, %v251_v52  ;;  %v1537_v52 = vld [vmem:[#allocation12 + $0xa8] sm:$0xff] }
  0xcb   :  { %821 = vmatpush.msra.mxu0 %v1537_v52 }
  0xcc   :  { %330 = vmatmul.bf16.vlgmr.msra.gmra.mxu1 %v253_v54 }
  0xcd   :  { %822 = vmatpush.msra.mxu0 %v1540_v55  ;;  %1144 = vmatpush.msra.mxu1 %v1505_v39 }
  0xcf   :  { %823 = vmatpush.msra.mxu0 %v775_v58  ;;  %1145 = vmatpush.msra.mxu1 %v1508_v40  ;;  %v1130_v40 = vld [vmem:[#allocation10 + $0x18] sm:$0xff] }
  0xd1   :  { %824 = vmatpush.msra.mxu0 %v774_v60  ;;  %1146 = vmatpush.msra.mxu1 %v1511_v41  ;;  %v1129_v41 = vld [vmem:[#allocation10 + $0x10] sm:$0xff] }
  0xd3   :  { %825 = vmatpush.msra.mxu0 %v773_v61  ;;  %1147 = vmatpush.msra.mxu1 %v1513_v42  ;;  %v1128_v42 = vld [vmem:[#allocation10 + $0x8] sm:$0xff] }
  0xd5   :  { %826 = vmatpush.msra.mxu0 %v772_v1  ;;  %1148 = vmatpush.msra.mxu1 %v1516_v43  ;;  %v1127_v43 = vld [vmem:[#allocation10] sm:$0xff] }
  0xd7   :  { %1149 = vmatpush.msra.mxu1 %v1519_v44 }
  0xd9   :  { %1150 = vmatpush.msra.mxu1 %v1522_v45  ;;  %v1174_v45 = vld [vmem:[%s1596_s11] ss:$0 sm:$0xff] }
  0xdb   :  { %1151 = vmatpush.msra.mxu1 %v1525_v46 }
  0xdd   :  { %1152 = vmatpush.msra.mxu1 %v1532_v48 }
  0xdf   :  { %1153 = vmatpush.msra.mxu1 %v1534_v49 }
  0xe1   :  { %1154 = vmatpush.msra.mxu1 %v1537_v52 }
  0xe3   :  { %1155 = vmatpush.msra.mxu1 %v1540_v55 }
  0xe5   :  { %1156 = vmatpush.msra.mxu1 %v775_v58 }
  0xe7   :  { %1157 = vmatpush.msra.mxu1 %v774_v60 }
  0xe9   :  { %1158 = vmatpush.msra.mxu1 %v773_v61 }
  0xeb   :  { %1159 = vmatpush.msra.mxu1 %v772_v1 }
 0x149   :  { %v331_v24 = vpop.f32.mrf.mxu1 }
 0x14a   :  { %v332_v30 = vadd.f32 %v1172_v27, %v331_v24  ;;  %v1134_v24 = vld [vmem:[#allocation10 + $0x38] sm:$0xff] }
 0x14b   :  { %720 = vmatpush.bf16.msrb.mxu2 %v1134_v24 }
 0x14f   :  { %721 = vmatpush.bf16.msrb.mxu2 %v1133_v26 }
 0x151   :  { %v333_v29 = vpop.f32.mrf.mxu1 }
 0x152   :  { %v334_v31 = vadd.f32 %v1172_v27, %v333_v29  ;;  %v1173_v27 = vld [vmem:[%s1594_s9] ss:$0 sm:$0xff] }
 0x153   :  { %722 = vmatpush.bf16.msrb.mxu2 %v1132_v28 }
 0x154   :  { %v336_v32 = vpack.c.bf16 %v334_v31, %v332_v30 }
 0x156   :  { %447 = vmatmul.bf16.vlgmr.msra.gmra.mxu2 %v336_v32  ;;  %461 = vmatmul.bf16.vlgmr.msra.gmra.mxu3 %v336_v32  ;;  %v1131_v32 = vld [vmem:[#allocation10 + $0x20] sm:$0xff] }
 0x157   :  { %723 = vmatpush.bf16.msrb.mxu2 %v1131_v32 }
 0x15b   :  { %724 = vmatpush.bf16.msrb.mxu2 %v1130_v40 }
 0x15f   :  { %725 = vmatpush.bf16.msrb.mxu2 %v1129_v41 }
 0x163   :  { %726 = vmatpush.bf16.msrb.mxu2 %v1128_v42 }
 0x167   :  { %727 = vmatpush.bf16.msrb.mxu2 %v1127_v43 }
 0x1d9   :  { %v448_v53 = vpop.f32.mrf.mxu2  ;;  %v462_v54 = vpop.f32.mrf.mxu3 }
 0x1da   :  { %v449_v56 = vadd.f32 %v448_v53, %v355_v50  ;;  %v463_v57 = vadd.f32 %v462_v54, %v356_v51 }
 0x1dc   :  { %v467_v59 = vmul.f32 0.5, %v463_v57  ;;  %804 = vmatmul.f32.vlgmr.msrb.gmra.mxu3 %v449_v56 }
 0x1de   :  { %v469_v62 = vmul.f32 1.442695, %v467_v59 }
 0x1e0   :  { %1176 = vpow2.f32 %v469_v62 }
 0x1e1   :  { %v450_v63 = vpop.f32.mrf.mxu2  ;;  %v464_v0 = vpop.f32.mrf.mxu3 }
 0x1e2   :  { %v451_v2 = vadd.f32 %v450_v63, %v355_v50  ;;  %v1544_v3 = vadd.f32 %v464_v0, %v356_v51 }
 0x1e4   :  { %v468_v4 = vmul.f32 0.5, %v1544_v3  ;;  %807 = vmatmul.f32.gmra.mxu3 %v451_v2 }
 0x1e6   :  { %v471_v6 = vmul.f32 1.442695, %v468_v4  ;;  %v1177_v10 = vpop.eup %1176 }
 0x1e7   :  { %v477_v13 = vmul.f32 %v1177_v10, %v1137_v9 }
 0x1e8   :  { %1178 = vpow2.f32 %v471_v6 }
 0x1e9   :  { %v479_v16 = vadd.f32 %v477_v13, %v449_v56  ;;  %v1175_v56 = vld [vmem:[%s1598_s13] ss:$0 sm:$0xff] }
 0x1ee   :  { %v1179_v14 = vpop.eup %1178 }
 0x1ef   :  { %v478_v15 = vmul.f32 %v1179_v14, %v1138_v11 }
 0x1f1   :  { %v1550_v17 = vadd.f32 %v478_v15, %v451_v2 }
 0x1f3   :  { %v481_v18 = vpack.c.bf16 %v1550_v17, %v479_v16 }
 0x1f5   :  { %558 = vmatmul.bf16.vlgmr.msrb.gmra.mxu0 %v481_v18 }
 0x205   :  { %827 = vmatmul.f32.vlgmr.msra.gmra.mxu0 %v463_v57 }
 0x25f   :  { %v805_v36 = vpop.f32.mrf.mxu3 }
 0x267   :  { %v808_v52 = vpop.f32.mrf.mxu3 }
 0x272   :  { %v559_v25 = vpop.f32.mrf.mxu0 }
 0x273   :  { %v560_v29 = vadd.f32 %v1173_v27, %v559_v25 }
 0x275   :  { %v564_v33 = vmax.f32 %v560_v29, 0.0 }
 0x27a   :  { %v561_v30 = vpop.f32.mrf.mxu0 }
 0x27b   :  { %v562_v31 = vadd.f32 %v1173_v27, %v561_v30 }
 0x27d   :  { %v565_v34 = vmax.f32 %v562_v31, 0.0 }
 0x27f   :  { %v566_v35 = vpack.c.bf16 %v565_v34, %v564_v33 }
 0x281   :  { %643 = vmatmul.bf16.vlgmr.msrb.gmra.mxu1 %v566_v35 }
 0x282   :  { %v828_v37 = vpop.f32.mrf.mxu0 }
 0x283   :  { %v829_v38 = vadd.f32 %v828_v37, %v805_v36 }
 0x285   :  { %v834_v39 = vadd.f32 %v829_v38, %v479_v16 }
 0x287   :  { %836 = vst [vmem:[%s1601_s16] sm:$0xff] %v834_v39 }
 0x291   :  { %830 = vmatmul.f32.vlgmr.msra.gmra.mxu1 %v1544_v3 }
 0x2fe   :  { %v644_v44 = vpop.f32.mrf.mxu1 }
 0x2ff   :  { %v645_v46 = vadd.f32 %v1174_v45, %v644_v44 }
 0x301   :  { %v649_v49 = vmax.f32 %v645_v46, 0.0 }
 0x306   :  { %v646_v47 = vpop.f32.mrf.mxu1 }
 0x307   :  { %v647_v48 = vadd.f32 %v1174_v45, %v646_v47 }
 0x309   :  { %v650_v50 = vmax.f32 %v647_v48, 0.0 }
 0x30b   :  { %v651_v51 = vpack.c.bf16 %v650_v50, %v649_v49 }
 0x30d   :  { %728 = vmatmul.bf16.vlgmr.msrb.gmra.mxu2 %v651_v51 }
 0x30e   :  { %v831_v53 = vpop.f32.mrf.mxu1 }
 0x30f   :  { %v832_v54 = vadd.f32 %v831_v53, %v808_v52 }
 0x311   :  { %v835_v55 = vadd.f32 %v832_v54, %v1550_v17 }
 0x313   :  { %837 = vst [vmem:[%s1601_s16 + $0x8] sm:$0xff] %v835_v55 }
 0x390   :  { %v729_v57 = vpop.f32.mrf.mxu2 }
 0x391   :  { %v730_v58 = vadd.f32 %v1175_v56, %v729_v57 }
 0x393   :  { %v734_v59 = vand.u32 2147483647, %v730_v58  ;;  %vm742_vm0 = vcmp.ge.f32.partialorder %v730_v58, 0.0 }
 0x395   :  { %v736_v60 = vsub.f32 0.0, %v734_v59 }
 0x397   :  { %v738_v61 = vmul.f32 1.442695, %v736_v60 }
 0x398   :  { %v731_v62 = vpop.f32.mrf.mxu2 }
 0x399   :  { %v732_v63 = vadd.f32 %v1175_v56, %v731_v62  ;;  %1180 = vpow2.f32 %v738_v61 }
 0x39b   :  { %v735_v0 = vand.u32 2147483647, %v732_v63  ;;  %vm743_vm1 = vcmp.ge.f32.partialorder %v732_v63, 0.0 }
 0x39d   :  { %v737_v1 = vsub.f32 0.0, %v735_v0 }
 0x39f   :  { %v740_v2 = vmul.f32 1.442695, %v737_v1  ;;  %v1181_v3 = vpop.eup %1180 }
 0x3a0   :  { %v746_v4 = vadd.f32 1.0, %v1181_v3  ;;  %v744_v9 = vsel %vm742_vm0, 1.0, %v1181_v3 }
 0x3a1   :  { %1182 = vpow2.f32 %v740_v2 }
 0x3a2   :  { %1184 = vrcp.f32 %v746_v4 }
 0x3a7   :  { %v1183_v5 = vpop.eup %1182 }
 0x3a8   :  { %v747_v6 = vadd.f32 1.0, %v1183_v5  ;;  %v1185_v7 = vpop.eup %1184  ;;  %v745_v10 = vsel %vm743_vm1, 1.0, %v1183_v5 }
 0x3a9   :  { %v750_v11 = vmul.f32 %v1185_v7, %v744_v9 }
 0x3aa   :  { %1186 = vrcp.f32 %v747_v6 }
 0x3b0   :  { %v1187_v8 = vpop.eup %1186 }
 0x3b1   :  { %v751_v12 = vmul.f32 %v1187_v8, %v745_v10 }
 0x3b3   :  { %v1142_v13 = vpack.c.bf16 %v751_v12, %v750_v11 }
 0x3b5   :  { %1143 = vst [vmem:[%s1600_s15] sm:$0xff] %v1142_v13  }
 0x3b6   :  { %846 = vsyncpa [#allocation3], 1 }
 0x3b7   :  { %847 = vsyncpa [#allocation5], 1 }
 0x3b8   :  { %848 = vsyncpa [#allocation8], 1 }
 0x3b9   :  { %849 = vsyncpa [#allocation11], 1 }

</bundles_post_ra>
